<compile_context>
chip_gen: v6e
topology: v6e:2x2x1
jax: 0.10.0
libtpu: 0.0.40
codegen_flags: <defaults>
</compile_context>

<pallas_src>
import functools

import jax
import jax.numpy as jnp
from jax.experimental import pallas as pl
from jax.experimental.pallas import tpu as pltpu

IGNORE_INDEX = -100


def _ce_kernel(logits_ref, target_ref, sum_ref, cnt_ref, *, ignore_index):
    """One (tile_n, C) batch tile: numerically-stable log-softmax over classes,
    one-hot gather of the target logit, masked vector accumulation of per-row
    NLL and valid-sample indicator into resident (tile_n, 1) output blocks
    (one pair of blocks per core-split)."""
    i = pl.program_id(1)  # reduction axis: batch tiles within this split

    @pl.when(i == 0)
    def _():
        sum_ref[...] = jnp.zeros_like(sum_ref)
        cnt_ref[...] = jnp.zeros_like(cnt_ref)

    # Native-dtype load; upcast to f32 in-kernel (hidden under the DMA).
    x = logits_ref[...].astype(jnp.float32)               # (TN, C)
    t = target_ref[...]                                    # (TN, 1) int32

    # Numerically-stable log-sum-exp over the class (lane) axis.
    m = jnp.max(x, axis=-1, keepdims=True)
    lse = jnp.log(jnp.sum(jnp.exp(x - m), axis=-1, keepdims=True)) + m  # (TN,1)

    # Gather the target-class logit via one-hot compare (no dynamic gather on TPU).
    col = jax.lax.broadcasted_iota(jnp.int32, x.shape, 1)
    onehot = col == t                                       # (TN, C) bool
    picked = jnp.sum(jnp.where(onehot, x, 0.0), axis=-1, keepdims=True)  # (TN,1)

    valid = (t != ignore_index).astype(jnp.float32)         # (TN, 1)

    # Pure vector adds each step; no per-step cross-sublane reduce or (1,1) RMW.
    sum_ref[...] += (lse - picked) * valid
    cnt_ref[...] += valid


def _pick_tile_n(n, c, itemsize, n_splits, max_tile=1024,
                 block_budget_bytes=8 * 1024 * 1024):
    """Largest batch tile whose double-buffered logits blocks stay well inside
    the scoped VMEM limit on every TPU generation (incl. v7x's 64 MiB)."""
    by_vmem = block_budget_bytes // max(1, c * itemsize)
    per_split = -(-n // n_splits)  # ceil
    tile = max(8, min(max_tile, by_vmem, per_split))
    return -(-tile // 8) * 8       # round up to a sublane multiple


def cross_entropy_loss_act(logits, targets, *, ignore_index=IGNORE_INDEX,
                           tile_n=None, n_splits=2):
    """Forward of CrossEntropyLoss_act: err = CE(logits, targets); 10*atan(err)+err."""
    N, C = logits.shape
    if tile_n is None:
        tile_n = _pick_tile_n(N, C, jnp.dtype(logits.dtype).itemsize, n_splits)
    tile_n = max(8, -(-int(tile_n) // 8) * 8)

    tiles_per_split = -(-N // (n_splits * tile_n))          # ceil
    n_padded = n_splits * tiles_per_split * tile_n
    n_pad = n_padded - N
    if n_pad:
        # Padded rows use ignore_index -> masked out in-kernel.
        logits = jnp.pad(logits, ((0, n_pad), (0, 0)))
        targets = jnp.pad(targets, (0, n_pad), constant_values=ignore_index)
    targets_2d = targets.astype(jnp.int32).reshape(n_padded, 1)

    row_map = lambda p, i: (p * tiles_per_split + i, 0)     # batch-tile block index
    acc_map = lambda p, i: (p, 0)                           # resident per-split block

    sum_out, cnt_out = pl.pallas_call(
        functools.partial(_ce_kernel, ignore_index=ignore_index),
        out_shape=(
            jax.ShapeDtypeStruct((n_splits * tile_n, 1), jnp.float32),
            jax.ShapeDtypeStruct((n_splits * tile_n, 1), jnp.float32),
        ),
        grid_spec=pltpu.PrefetchScalarGridSpec(
            num_scalar_prefetch=0,
            grid=(n_splits, tiles_per_split),
            in_specs=[
                pl.BlockSpec((tile_n, C), row_map),         # logits, native dtype
                pl.BlockSpec((tile_n, 1), row_map),         # targets
            ],
            out_specs=[
                pl.BlockSpec((tile_n, 1), acc_map),         # per-row NLL partials
                pl.BlockSpec((tile_n, 1), acc_map),         # per-row valid partials
            ],
        ),
        compiler_params=pltpu.CompilerParams(
            dimension_semantics=("parallel", "arbitrary"),
            vmem_limit_bytes=32 * 1024 * 1024,
        ),
    )(logits, targets_2d)

    # Tiny JAX epilogue: final reduce, 'mean' reduction, activation on the loss.
    err = jnp.sum(sum_out) / jnp.sum(cnt_out)
    return 10.0 * jnp.arctan(err) + err


def _reference(logits, targets, ignore_index=IGNORE_INDEX):
    """Pure-JAX reference for verification."""
    logp = jax.nn.log_softmax(logits.astype(jnp.float32), axis=1)
    valid = targets != ignore_index
    safe_t = jnp.where(valid, targets, 0)
    nll = -jnp.take_along_axis(logp, safe_t[:, None], axis=1)[:, 0]
    err = jnp.sum(jnp.where(valid, nll, 0.0)) / jnp.sum(valid.astype(jnp.float32))
    return 10.0 * jnp.arctan(err) + err


if __name__ == "__main__":
    key = jax.random.PRNGKey(0)

    # Case 1: CIFAR-10-like small batch, exercises ignore_index + padding split.
    k1, k2, key = jax.random.split(key, 3)
    N, C = 8, 10
    logits = jax.random.normal(k1, (N, C), dtype=jnp.float32)
    targets = jax.random.randint(k2, (N,), 0, C, dtype=jnp.int32)
    targets = targets.at[3].set(IGNORE_INDEX)
    out = jax.block_until_ready(cross_entropy_loss_act(logits, targets))
    ref = _reference(logits, targets)
    assert jnp.allclose(out, ref, rtol=1e-4, atol=1e-4), (out, ref)

    # Case 2: odd N and C with a small explicit tile -> multiple batch tiles per
    # core-split, exercising the resident-accumulator (arbitrary axis) path and
    # padding on both splits.
    k1, k2, key = jax.random.split(key, 3)
    N2, C2 = 136, 130
    logits2 = jax.random.normal(k1, (N2, C2), dtype=jnp.float32)
    targets2 = jax.random.randint(k2, (N2,), 0, C2, dtype=jnp.int32)
    targets2 = targets2.at[17].set(IGNORE_INDEX)
    out2 = jax.block_until_ready(
        cross_entropy_loss_act(logits2, targets2, tile_n=32))
    ref2 = _reference(logits2, targets2)
    assert jnp.allclose(out2, ref2, rtol=1e-4, atol=1e-4), (out2, ref2)

    print("KERNEL_OK")
</pallas_src>

<mosaic_0001>
module attributes {stable_mosaic.version = 11 : i64} {
  func.func @_ce_kernel(%arg0: i32, %arg1: i32, %arg2: memref<8x10xf32, #tpu.memory_space<vmem>>, %arg3: memref<8x1xi32, #tpu.memory_space<vmem>>, %arg4: memref<8x1xf32, #tpu.memory_space<vmem>>, %arg5: memref<8x1xf32, #tpu.memory_space<vmem>>) attributes {dimension_semantics = [#tpu.dimension_semantics<parallel>, #tpu.dimension_semantics<arbitrary>], iteration_bounds = array<i64: 2, 1>, scalar_prefetch = 0 : i64, scratch_operands = 0 : i64, tpu.core_type = #tpu.core_type<tc>, window_params = [{transform_indices = @transform_0, window_bounds = array<i64: 8, 10>}, {transform_indices = @transform_1, window_bounds = array<i64: 8, 1>}, {transform_indices = @transform_2, window_bounds = array<i64: 8, 1>}, {transform_indices = @transform_3, window_bounds = array<i64: 8, 1>}]} {
    %c0_i32 = arith.constant 0 : i32
    %0 = arith.cmpi eq, %arg1, %c0_i32 : i32
    %1 = arith.extui %0 : i1 to i32
    %c0_i32_0 = arith.constant 0 : i32
    %2 = arith.cmpi ne, %1, %c0_i32_0 : i32
    scf.if %2 {
      %cst_15 = arith.constant 0.000000e+00 : f32
      %33 = vector.broadcast %cst_15 : f32 to vector<8x1xf32>
      %c0_16 = arith.constant 0 : index
      %c0_17 = arith.constant 0 : index
      %34 = vector.load %arg4[%c0_16, %c0_17] : memref<8x1xf32, #tpu.memory_space<vmem>>, vector<8x1xf32>
      tpu.vector_store %arg4[%c0_16, %c0_17], %33 {strides = array<i32>} : memref<8x1xf32, #tpu.memory_space<vmem>>, vector<8x1xf32>,
      %cst_18 = arith.constant 0.000000e+00 : f32
      %35 = vector.broadcast %cst_18 : f32 to vector<8x1xf32>
      %c0_19 = arith.constant 0 : index
      %c0_20 = arith.constant 0 : index
      %36 = vector.load %arg5[%c0_19, %c0_20] : memref<8x1xf32, #tpu.memory_space<vmem>>, vector<8x1xf32>
      tpu.vector_store %arg5[%c0_19, %c0_20], %35 {strides = array<i32>} : memref<8x1xf32, #tpu.memory_space<vmem>>, vector<8x1xf32>,
    } else {
    }
    %c0 = arith.constant 0 : index
    %c0_1 = arith.constant 0 : index
    %3 = vector.load %arg2[%c0, %c0_1] : memref<8x10xf32, #tpu.memory_space<vmem>>, vector<8x10xf32>
    %c0_2 = arith.constant 0 : index
    %c0_3 = arith.constant 0 : index
    %4 = vector.load %arg3[%c0_2, %c0_3] : memref<8x1xi32, #tpu.memory_space<vmem>>, vector<8x1xi32>
    %cst = arith.constant dense<0xFF800000> : vector<8xf32>
    %5 = vector.multi_reduction <maximumf>, %3, %cst [1] : vector<8x10xf32> to vector<8xf32>
    %6 = vector.shape_cast %5 : vector<8xf32> to vector<8x1xf32>
    %7 = vector.broadcast %6 : vector<8x1xf32> to vector<8x10xf32>
    %8 = arith.subf %3, %7 : vector<8x10xf32>
    %9 = math.exp %8 : vector<8x10xf32>
    %cst_4 = arith.constant dense<0.000000e+00> : vector<8xf32>
    %10 = vector.multi_reduction <add>, %9, %cst_4 [1] : vector<8x10xf32> to vector<8xf32>
    %11 = vector.shape_cast %10 : vector<8xf32> to vector<8x1xf32>
    %12 = math.log %11 : vector<8x1xf32>
    %13 = arith.addf %12, %6 : vector<8x1xf32>
    %14 = tpu.iota {dimensions = array<i32: 1>} : vector<8x10xi32>
    %15 = vector.broadcast %4 : vector<8x1xi32> to vector<8x10xi32>
    %16 = arith.cmpi eq, %14, %15 : vector<8x10xi32>
    %cst_5 = arith.constant 0.000000e+00 : f32
    %17 = vector.broadcast %cst_5 : f32 to vector<8x10xf32>
    %18 = arith.select %16, %3, %17 : vector<8x10xi1>, vector<8x10xf32>
    %cst_6 = arith.constant dense<0.000000e+00> : vector<8xf32>
    %19 = vector.multi_reduction <add>, %18, %cst_6 [1] : vector<8x10xf32> to vector<8xf32>
    %20 = vector.shape_cast %19 : vector<8xf32> to vector<8x1xf32>
    %c-100_i32 = arith.constant -100 : i32
    %21 = vector.broadcast %c-100_i32 : i32 to vector<8x1xi32>
    %22 = arith.cmpi ne, %4, %21 : vector<8x1xi32>
    %23 = arith.extui %22 : vector<8x1xi1> to vector<8x1xi32>
    %24 = arith.sitofp %23 : vector<8x1xi32> to vector<8x1xf32>
    %c0_7 = arith.constant 0 : index
    %c0_8 = arith.constant 0 : index
    %25 = vector.load %arg4[%c0_7, %c0_8] : memref<8x1xf32, #tpu.memory_space<vmem>>, vector<8x1xf32>
    %26 = arith.subf %13, %20 : vector<8x1xf32>
    %27 = arith.mulf %26, %24 : vector<8x1xf32>
    %28 = arith.addf %25, %27 : vector<8x1xf32>
    %c0_9 = arith.constant 0 : index
    %c0_10 = arith.constant 0 : index
    %29 = vector.load %arg4[%c0_9, %c0_10] : memref<8x1xf32, #tpu.memory_space<vmem>>, vector<8x1xf32>
    tpu.vector_store %arg4[%c0_9, %c0_10], %28 {strides = array<i32>} : memref<8x1xf32, #tpu.memory_space<vmem>>, vector<8x1xf32>,
    %c0_11 = arith.constant 0 : index
    %c0_12 = arith.constant 0 : index
    %30 = vector.load %arg5[%c0_11, %c0_12] : memref<8x1xf32, #tpu.memory_space<vmem>>, vector<8x1xf32>
    %31 = arith.addf %30, %24 : vector<8x1xf32>
    %c0_13 = arith.constant 0 : index
    %c0_14 = arith.constant 0 : index
    %32 = vector.load %arg5[%c0_13, %c0_14] : memref<8x1xf32, #tpu.memory_space<vmem>>, vector<8x1xf32>
    tpu.vector_store %arg5[%c0_13, %c0_14], %31 {strides = array<i32>} : memref<8x1xf32, #tpu.memory_space<vmem>>, vector<8x1xf32>,
    return
  }
  func.func @transform_0(%arg0: i32, %arg1: i32) -> (i32, i32) {
    %c1_i32 = arith.constant 1 : i32
    %0 = arith.muli %arg0, %c1_i32 : i32
    %1 = arith.addi %0, %arg1 : i32
    %c0_i32 = arith.constant 0 : i32
    %c0_i32_0 = arith.constant 0 : i32
    return %1, %c0_i32 : i32, i32
  }
  func.func @transform_1(%arg0: i32, %arg1: i32) -> (i32, i32) {
    %c1_i32 = arith.constant 1 : i32
    %0 = arith.muli %arg0, %c1_i32 : i32
    %1 = arith.addi %0, %arg1 : i32
    %c0_i32 = arith.constant 0 : i32
    %c0_i32_0 = arith.constant 0 : i32
    return %1, %c0_i32 : i32, i32
  }
  func.func @transform_2(%arg0: i32, %arg1: i32) -> (i32, i32) {
    %c0_i32 = arith.constant 0 : i32
    %c0_i32_0 = arith.constant 0 : i32
    return %arg0, %c0_i32 : i32, i32
  }
  func.func @transform_3(%arg0: i32, %arg1: i32) -> (i32, i32) {
    %c0_i32 = arith.constant 0 : i32
    %c0_i32_0 = arith.constant 0 : i32
    return %arg0, %c0_i32 : i32, i32
  }
}

</mosaic_0001>

<bundles_post_ra>
// kernel: tpu_custom_call.1
= control target key start
LH: loop header
LB: loop body
LE: loop exit
PB: predicated region body
PF: predicated region fallthrough
CT: control target
= control target key end

     0   :  { %s457_s12 = smov 0   ;;  %s459_s13 = smov 0   ;;  %s503_s0 = inlined_call_operand.vmem [shape: f32[16,10], index: 0, kind: input, shape index: {}]   ;;  %s504_s1 = inlined_call_operand.vmem [shape: s32[16,1], index: 1, kind: input, shape index: {}]   ;;  %s505_s2 = inlined_call_operand.vmem [shape: f32[16,1], index: 2, kind: output, shape index: {0}]   ;;  %s506_s3 = inlined_call_operand.vmem [shape: f32[16,1], index: 3, kind: output, shape index: {1}]  }
   0x1   :  { %s461_s14 = smov 0  }
   0x2 LB: > { %s26_s15 = sadd.s32 1, %s429_s13  ;;  %p372_p0 = scmp.ge.s32.totalorder %s433_s14, 1  ;;  %s433_s14 = sphi %s461_s14, %s14_s14   ;;  %s429_s13 = sphi %s459_s13, %s508_s13   ;;  %s425_s12 = sphi %s457_s12, %s507_s12  }
   0x3   : > { %p28_p1 = scmp.ge.s32.totalorder %s26_s15, 2  ;;  %p168_p2 = scmp.lt.s32.totalorder %s433_s14, 3 }
   0x5   : > { %s510_s15 = smov (%p28_p1, %s26_s15), 0  ;;  %p169_p3 = pnand %p372_p0, %p168_p2 }
   0x6   : > { %p201_p4 = scmp.lt.s32.totalorder (!%p169_p3), %s425_s12, 1 }
   0x7   : > { %172 = sbr.rel (%p169_p3) target bundleno = 337 (0x151), region = 28 }
   0xc   : > { %v435_v0 = vmov 0   ;;  %s512_s12 = smov (!%p201_p4, %s425_s12), 1  ;;  %vm229_vm0 = vcmask 80896   ;;  %v242_v7 = vlaneseq  ;;  %vm224_vm2 = vcmask 7168  }
   0xd   : > { %406 = vset.pattern.permute.xlu0 %v435_v0  ;;  %s373_s16 = sshll.u32 %s512_s12, 3  ;;  %v436_v14 = vmov 0.0  }
   0xe   : > { %s204_s19 = scalar_lea.vmem %s503_s0, %s373_s16  ;;  %s210_s22 = scalar_lea.vmem %s504_s1, %s373_s16  ;;  %v243_v8 = vand.u32 127, %v242_v7 }
   0xf   : > { %v227_v1 = vld [vmem:[%s204_s19] sm:$0xff]  ;;  %s215_s25 = scalar_lea.vmem %s505_s2, %s373_s16  ;;  %s219_s28 = scalar_lea.vmem %s506_s3, %s373_s16 }
  0x10   : > { %v230_v2 = vsel %vm229_vm0, %v227_v1, -inf  ;;  %v228_v3 = vld [vmem:[%s210_s22] sm:$0xff]  ;;  %225 = vst.msk [vmem:[%s215_s25] sm:$0xff] %vm224_vm2, %v436_v14  ;;  %226 = vst.msk [vmem:[%s219_s28] sm:$0xff] %vm224_vm2, %v436_v14 }
  0x11   : > { %231 = vmax.xlane.f32.xlu0 %v230_v2  ;;  %vm252_vm3 = vcmp.ne.s32.totalorder %v228_v3, 4294967196 }
  0x12   : > { %v377_v15 = vsel %vm252_vm3, 1.0, %v436_v14 }
  0x17   : > { %v261_v16 = vld [vmem:[%s219_s28] sm:$0xff] }
  0x18   : > { %v262_v17 = vadd.f32 %v377_v15, %v261_v16  ;;  %v255_v24 = vld [vmem:[%s215_s25] sm:$0xff] }
  0x1a   : > { %263 = vst.msk [vmem:[%s219_s28] sm:$0xff] %vm224_vm2, %v262_v17 }
  0x27   : > { %245 = vperm.xlu0 %406, %v228_v3  }
  0x9a   : > { %v232_v4 = vpop.xlane.xlu0 %231 }
  0x9b   : > { %v233_v5 = vsub.f32 %v227_v1, %v232_v4 }
  0x9d   : > { %v234_v6 = vmul.f32 1.442695, %v233_v5 }
  0x9f   : > { %407 = vpow2.f32 %v234_v6 }
  0xa2   : > { %v246_v9 = vpop.permute.xlu0 %245 }
  0xa3   : > { %vm247_vm1 = vcmp.eq.s32.totalorder %v243_v8, %v246_v9 }
  0xa4   : > { %v248_v11 = vsel %vm247_vm1, %v227_v1, 0.0 }
  0xa5   : > { %v249_v13 = vsel %vm229_vm0, %v248_v11, 0.0 }
  0xac   : > { %v408_v10 = vpop.eup %407 }
  0xad   : > { %v236_v12 = vsel %vm229_vm0, %v408_v10, 0.0 }
  0xae   : > { %237 = vadd.xlane.f32.xlu1 %v236_v12 }
  0xb2   : > { %250 = vadd.xlane.f32.xlu1 %v249_v13 }
 0x137   : > { %v238_v18 = vpop.xlane.xlu1 %237 }
 0x138   : > { %409 = vlog2.f32 %v238_v18 }
 0x13b   : > { %v251_v21 = vpop.xlane.xlu1 %250 }
 0x145   : > { %v410_v19 = vpop.eup %409 }
 0x146   : > { %v240_v20 = vmul.f32 0.6931472, %v410_v19 }
 0x148   : > { %v241_v22 = vadd.f32 %v240_v20, %v232_v4 }
 0x14a   : > { %v256_v23 = vsub.f32 %v241_v22, %v251_v21 }
 0x14c   : > { %v257_v25 = vmul.f32 %v377_v15, %v256_v23 }
 0x14e   : > { %v258_v26 = vadd.f32 %v257_v25, %v255_v24 }
 0x150   : > { %260 = vst.msk [vmem:[%s215_s25] sm:$0xff] %vm224_vm2, %v258_v26 }
 0x151 PF: > { %s14_s14 = sadd.s32 1, %s433_s14   ;;  %s507_s12 = smov %s429_s13 }
 0x152   : > { %p11_p5 = scmp.ge.s32.totalorder %s14_s14, 4   ;;  %s508_s13 = smov %s510_s15 }
 0x154   :  { %13 = sbr.rel (!%p11_p5) target bundleno = 2 (0x2), region = 77 }

</bundles_post_ra>
